<compile_context>
chip_gen: v7x
topology: tpu7x:2x2x1
jax: 0.10.0
libtpu: 0.0.40
codegen_flags: <defaults>
</compile_context>

<pallas_src>
import math

import jax
import jax.numpy as jnp
from jax.experimental import pallas as pl
from jax.experimental.pallas import tpu as pltpu


def _gelu_exact(x):
    # matches torch.nn.GELU() default (erf-based, not tanh approximation)
    return 0.5 * x * (1.0 + jax.lax.erf(x * (1.0 / math.sqrt(2.0))))


# --------------------------------------------------------------------------- #
# Kernels
# --------------------------------------------------------------------------- #


def _kernel_single(x_ref, w1_ref, b1_ref, o_ref):
    """num_layers == 1: a single Linear."""
    wdt = w1_ref.dtype
    h = (jnp.dot(x_ref[...].astype(wdt), w1_ref[...],
                 preferred_element_type=jnp.float32)
         + b1_ref[...].astype(jnp.float32))
    o_ref[...] = h.astype(o_ref.dtype)


def _kernel_resident(x_ref, w1_ref, b1_ref, wr_ref, br_ref, o_ref):
    """All hidden-layer weights of this branch are VMEM-resident; loop layers
    inside the body (statically unrolled — L is small for a projector)."""
    wdt = w1_ref.dtype
    h = (jnp.dot(x_ref[...].astype(wdt), w1_ref[...],
                 preferred_element_type=jnp.float32)
         + b1_ref[...].astype(jnp.float32))
    num_hidden = wr_ref.shape[0]
    for l in range(num_hidden):
        h_in = _gelu_exact(h).astype(wdt)
        h = (jnp.dot(h_in, wr_ref[l], preferred_element_type=jnp.float32)
             + br_ref[l].astype(jnp.float32))
    o_ref[...] = h.astype(o_ref.dtype)


def _kernel_streamed_f32out(x_ref, w1_ref, b1_ref, wr_ref, br_ref, o_ref):
    """Streamed layer axis (grid axis 3); f32 output block IS the layer carry
    (it stays VMEM-resident across the layer axis) — no scratch, no extra copy."""
    l = pl.program_id(3)
    wdt = w1_ref.dtype

    @pl.when(l == 0)
    def _():
        o_ref[...] = (
            jnp.dot(x_ref[...].astype(wdt), w1_ref[...],
                    preferred_element_type=jnp.float32)
            + b1_ref[...].astype(jnp.float32))

    @pl.when(l > 0)
    def _():
        h_in = _gelu_exact(o_ref[...]).astype(wdt)
        o_ref[...] = (
            jnp.dot(h_in, wr_ref[...], preferred_element_type=jnp.float32)
            + br_ref[...].astype(jnp.float32))


def _kernel_streamed_scratch(x_ref, w1_ref, b1_ref, wr_ref, br_ref, o_ref, h_ref):
    """Streamed layer axis; f32 VMEM scratch carries the activation (used when the
    output dtype is narrower than f32)."""
    l = pl.program_id(3)
    wdt = w1_ref.dtype

    @pl.when(l == 0)
    def _():
        h_ref[...] = (
            jnp.dot(x_ref[...].astype(wdt), w1_ref[...],
                    preferred_element_type=jnp.float32)
            + b1_ref[...].astype(jnp.float32))

    @pl.when(l > 0)
    def _():
        h_in = _gelu_exact(h_ref[...]).astype(wdt)
        h_ref[...] = (
            jnp.dot(h_in, wr_ref[...], preferred_element_type=jnp.float32)
            + br_ref[...].astype(jnp.float32))

    @pl.when(l == pl.num_programs(3) - 1)
    def _():
        o_ref[...] = h_ref[...].astype(o_ref.dtype)


# --------------------------------------------------------------------------- #
# VMEM-aware planning
# --------------------------------------------------------------------------- #


def _vmem_capacity_bytes():
    try:
        return int(pltpu.get_tpu_info().vmem_capacity_bytes)
    except Exception:
        return 64 * 1024 * 1024  # conservative (v7x per-TC) fallback


def _min_row_tile(dtype):
    # second-minor tiling granularity: 8 (f32) / 16 (bf16) / 32 (int8/fp8) rows
    return {4: 8, 2: 16, 1: 32}.get(jnp.dtype(dtype).itemsize, 8)


def _plan(S, D_in, H, L, x_dtype, w_dtype, out_dtype, force_resident=None):
    """Pick (row_tile TS, resident?, vmem_limit_bytes) from the chip's VMEM size."""
    cap = _vmem_capacity_bytes()
    vmem_limit = int(cap * 0.85)   # leave headroom for compiler scratch/semaphores
    budget = int(cap * 0.70)       # sizing budget below the limit

    xb = jnp.dtype(x_dtype).itemsize
    wb = jnp.dtype(w_dtype).itemsize
    ob = jnp.dtype(out_dtype).itemsize

    def act_bytes(ts):
        # x tile (double-buffered) + out tile (double-buffered) + f32 carry/work set
        return 2 * ts * D_in * xb + 2 * ts * H * ob + 2 * ts * H * 4

    w1_bytes = 2 * (D_in * H + H) * wb                               # double-buffered
    w_resident = w1_bytes + 2 * L * (H * H + H) * wb                 # whole stack
    w_streamed = w1_bytes + (2 * (H * H + H) * wb if L > 0 else 0)   # one layer

    mt = max(_min_row_tile(x_dtype), _min_row_tile(out_dtype))
    resident = (L == 0) or (w_resident + act_bytes(min(S, mt)) <= budget)
    if force_resident is not None and L > 0:
        resident = bool(force_resident)
    w_need = w_resident if resident else w_streamed

    cands = [c for c in (1024, 768, 512, 384, 256, 128, 64, 32, 16, 8)
             if c <= S and S % c == 0 and c % mt == 0]
    ts = S  # full-extent block is always layout-legal
    for c in cands:
        if w_need + act_bytes(c) <= budget:
            ts = c
            break
    else:
        if cands:
            ts = cands[-1]
    return ts, resident, vmem_limit


# --------------------------------------------------------------------------- #
# Wrapper
# --------------------------------------------------------------------------- #


def mlp_vector_projector(x, params, *, num_layers, width, weights_resident=None):
    """x: (B, S, D_in). params: dict of stacked per-branch weights.

    Returns (B, width*S, H) with the same semantics as the PyTorch module.
    `weights_resident` forces the plan (None = auto, VMEM-aware).
    """
    assert num_layers >= 1
    B, S, D_in = x.shape
    H = params["w1"].shape[-1]
    L = num_layers - 1
    w_dtype = params["w1"].dtype
    out_dtype = x.dtype

    TS, resident, vmem_limit = _plan(S, D_in, H, L, x.dtype, w_dtype, out_dtype,
                                     force_resident=weights_resident)
    n_s = S // TS

    out_struct = jax.ShapeDtypeStruct((B, width, S, H), out_dtype)

    if L == 0:
        grid = (width, B, n_s)
        out = pl.pallas_call(
            _kernel_single,
            out_shape=out_struct,
            grid=grid,
            in_specs=[
                pl.BlockSpec((None, TS, D_in), lambda w, b, s: (b, s, 0)),
                pl.BlockSpec((None, D_in, H), lambda w, b, s: (w, 0, 0)),
                pl.BlockSpec((None, 1, H), lambda w, b, s: (w, 0, 0)),
            ],
            out_specs=pl.BlockSpec((None, None, TS, H),
                                   lambda w, b, s: (b, w, s, 0)),
            compiler_params=pltpu.CompilerParams(
                dimension_semantics=("parallel", "parallel", "parallel"),
                vmem_limit_bytes=vmem_limit),
        )(x, params["w1"], params["b1"])

    elif resident:
        # Hidden-layer weights of branch w stay VMEM-resident across b and s.
        grid = (width, B, n_s)
        out = pl.pallas_call(
            _kernel_resident,
            out_shape=out_struct,
            grid=grid,
            in_specs=[
                pl.BlockSpec((None, TS, D_in), lambda w, b, s: (b, s, 0)),
                pl.BlockSpec((None, D_in, H), lambda w, b, s: (w, 0, 0)),
                pl.BlockSpec((None, 1, H), lambda w, b, s: (w, 0, 0)),
                pl.BlockSpec((None, L, H, H), lambda w, b, s: (w, 0, 0, 0)),
                pl.BlockSpec((None, L, 1, H), lambda w, b, s: (w, 0, 0, 0)),
            ],
            out_specs=pl.BlockSpec((None, None, TS, H),
                                   lambda w, b, s: (b, w, s, 0)),
            compiler_params=pltpu.CompilerParams(
                dimension_semantics=("parallel", "parallel", "parallel"),
                vmem_limit_bytes=vmem_limit),
        )(x, params["w1"], params["b1"], params["w_rest"], params["b_rest"])

    else:
        # Streamed plan: only one HxH layer weight resident at a time.
        grid = (width, B, n_s, num_layers)
        in_specs = [
            # x tile: resident across the layer axis (index map ignores l).
            pl.BlockSpec((None, TS, D_in), lambda w, b, s, l: (b, s, 0)),
            # branch-w first-layer weights: resident across b, s, l.
            pl.BlockSpec((None, D_in, H), lambda w, b, s, l: (w, 0, 0)),
            pl.BlockSpec((None, 1, H), lambda w, b, s, l: (w, 0, 0)),
            # one HxH layer weight at a time; l==0 prefetches layer 0's weights
            # while the first matmul runs.
            pl.BlockSpec((None, None, H, H),
                         lambda w, b, s, l: (w, jnp.maximum(l - 1, 0), 0, 0)),
            pl.BlockSpec((None, None, 1, H),
                         lambda w, b, s, l: (w, jnp.maximum(l - 1, 0), 0, 0)),
        ]
        out_spec = pl.BlockSpec((None, None, TS, H),
                                lambda w, b, s, l: (b, w, s, 0))
        common = dict(
            out_shape=out_struct,
            grid=grid,
            in_specs=in_specs,
            out_specs=out_spec,
            compiler_params=pltpu.CompilerParams(
                dimension_semantics=("parallel", "parallel", "parallel",
                                     "arbitrary"),
                vmem_limit_bytes=vmem_limit),
        )
        if jnp.dtype(out_dtype) == jnp.float32:
            out = pl.pallas_call(_kernel_streamed_f32out, **common)(
                x, params["w1"], params["b1"], params["w_rest"], params["b_rest"])
        else:
            out = pl.pallas_call(
                _kernel_streamed_scratch,
                scratch_shapes=[pltpu.VMEM((TS, H), jnp.float32)],
                **common,
            )(x, params["w1"], params["b1"], params["w_rest"], params["b_rest"])

    # (B, width, S, H) -> (B, width*S, H): row-major contiguous, free reshape
    # (this IS torch.cat(dim=-2) ordering: rows [w*S:(w+1)*S] come from branch w).
    return out.reshape(B, width * S, H)


# --------------------------------------------------------------------------- #
# Parameters + pure-JAX reference
# --------------------------------------------------------------------------- #


def init_params(key, input_hidden_size, lm_hidden_size, num_layers, width):
    """Deterministic synthetic parameters (stacked across the `width` branches)."""
    D_in, H = input_hidden_size, lm_hidden_size
    k1, k2, k3, k4 = jax.random.split(key, 4)
    params = {
        "w1": 0.05 * jax.random.normal(k1, (width, D_in, H), jnp.float32),
        "b1": 0.05 * jax.random.normal(k2, (width, 1, H), jnp.float32),
    }
    if num_layers >= 2:
        L = num_layers - 1
        params["w_rest"] = 0.05 * jax.random.normal(k3, (width, L, H, H), jnp.float32)
        params["b_rest"] = 0.05 * jax.random.normal(k4, (width, L, 1, H), jnp.float32)
    return params


def reference(x, params, *, num_layers, width):
    """Pure-JAX reference mirroring the PyTorch forward (computed in f32)."""
    xf = x.astype(jnp.float32)
    outs = []
    for w in range(width):
        h = xf @ params["w1"][w].astype(jnp.float32) \
            + params["b1"][w][0].astype(jnp.float32)
        if num_layers >= 2:
            for l in range(num_layers - 1):
                h = _gelu_exact(h)
                h = h @ params["w_rest"][w, l].astype(jnp.float32) \
                    + params["b_rest"][w, l, 0].astype(jnp.float32)
        outs.append(h)
    return jnp.concatenate(outs, axis=-2)


if __name__ == "__main__":
    B, S = 2, 8
    input_hidden_size = 32
    lm_hidden_size = 32

    key = jax.random.PRNGKey(0)
    kx, kp = jax.random.split(key)
    x = jax.random.normal(kx, (B, S, input_hidden_size), jnp.float32)

    # 1) deep MLP, auto plan (resident weights at these sizes), f32
    params = init_params(kp, input_hidden_size, lm_hidden_size, 2, 3)
    out = jax.block_until_ready(
        mlp_vector_projector(x, params, num_layers=2, width=3))
    ref = reference(x, params, num_layers=2, width=3)
    assert out.shape == (B, 3 * S, lm_hidden_size), out.shape
    assert jnp.allclose(out, ref, atol=1e-5, rtol=1e-5), \
        float(jnp.max(jnp.abs(out - ref)))

    # 2) same problem, forced streamed-layer plan (f32 -> direct output carry)
    out_s = jax.block_until_ready(
        mlp_vector_projector(x, params, num_layers=2, width=3,
                             weights_resident=False))
    assert jnp.allclose(out_s, ref, atol=1e-5, rtol=1e-5), \
        float(jnp.max(jnp.abs(out_s - ref)))

    # 3) bf16 params/activations, forced streamed plan (exercises f32 scratch carry
    #    and the bf16 MXU operand cast)
    x_b = x.astype(jnp.bfloat16)
    params_b = jax.tree_util.tree_map(
        lambda a: a.astype(jnp.bfloat16),
        init_params(kp, input_hidden_size, lm_hidden_size, 3, 2))
    out_b = jax.block_until_ready(
        mlp_vector_projector(x_b, params_b, num_layers=3, width=2,
                             weights_resident=False))
    ref_b = reference(x_b, params_b, num_layers=3, width=2)
    assert out_b.shape == (B, 2 * S, lm_hidden_size), out_b.shape
    assert jnp.allclose(out_b.astype(jnp.float32), ref_b, atol=3e-2, rtol=3e-2), \
        float(jnp.max(jnp.abs(out_b.astype(jnp.float32) - ref_b)))

    # 4) num_layers == 1 path
    params1 = init_params(kp, input_hidden_size, lm_hidden_size, 1, 2)
    out1 = jax.block_until_ready(
        mlp_vector_projector(x, params1, num_layers=1, width=2))
    ref1 = reference(x, params1, num_layers=1, width=2)
    assert out1.shape == (B, 2 * S, lm_hidden_size), out1.shape
    assert jnp.allclose(out1, ref1, atol=1e-5, rtol=1e-5)

    print("KERNEL_OK")
</pallas_src>

<mosaic_0001>
module attributes {stable_mosaic.version = 11 : i64} {
  func.func @_kernel_resident(%arg0: i32, %arg1: i32, %arg2: i32, %arg3: memref<1x8x32xf32, #tpu.memory_space<vmem>>, %arg4: memref<1x32x32xf32, #tpu.memory_space<vmem>>, %arg5: memref<1x1x32xf32, #tpu.memory_space<vmem>>, %arg6: memref<1x1x32x32xf32, #tpu.memory_space<vmem>>, %arg7: memref<1x1x1x32xf32, #tpu.memory_space<vmem>>, %arg8: memref<1x1x8x32xf32, #tpu.memory_space<vmem>>) attributes {dimension_semantics = [#tpu.dimension_semantics<parallel>, #tpu.dimension_semantics<parallel>, #tpu.dimension_semantics<parallel>], iteration_bounds = array<i64: 3, 2, 1>, scalar_prefetch = 0 : i64, scratch_operands = 0 : i64, tpu.core_type = #tpu.core_type<tc>, window_params = [{transform_indices = @transform_0, window_bounds = array<i64: 1, 8, 32>}, {transform_indices = @transform_1, window_bounds = array<i64: 1, 32, 32>}, {transform_indices = @transform_2, window_bounds = array<i64: 1, 1, 32>}, {transform_indices = @transform_3, window_bounds = array<i64: 1, 1, 32, 32>}, {transform_indices = @transform_4, window_bounds = array<i64: 1, 1, 1, 32>}, {transform_indices = @transform_5, window_bounds = array<i64: 1, 1, 8, 32>}]} {
    %c0 = arith.constant 0 : index
    %c0_0 = arith.constant 0 : index
    %c0_1 = arith.constant 0 : index
    %0 = vector.load %arg3[%c0, %c0_0, %c0_1] : memref<1x8x32xf32, #tpu.memory_space<vmem>>, vector<1x8x32xf32>
    %1 = vector.shape_cast %0 : vector<1x8x32xf32> to vector<8x32xf32>
    %c0_2 = arith.constant 0 : index
    %c0_3 = arith.constant 0 : index
    %c0_4 = arith.constant 0 : index
    %2 = vector.load %arg4[%c0_2, %c0_3, %c0_4] : memref<1x32x32xf32, #tpu.memory_space<vmem>>, vector<1x32x32xf32>
    %3 = vector.shape_cast %2 : vector<1x32x32xf32> to vector<32x32xf32>
    %cst = arith.constant dense<0.000000e+00> : vector<8x32xf32>
    %4 = tpu.matmul %1, %3, %cst {dimension_numbers = #tpu.dot_dimension_numbers<[1], [0], [0], [1], [0, 0, 1, 1], [], []>} : vector<8x32xf32>, vector<32x32xf32>, vector<8x32xf32> -> vector<8x32xf32>
    %c0_5 = arith.constant 0 : index
    %c0_6 = arith.constant 0 : index
    %c0_7 = arith.constant 0 : index
    %5 = vector.load %arg5[%c0_5, %c0_6, %c0_7] : memref<1x1x32xf32, #tpu.memory_space<vmem>>, vector<1x1x32xf32>
    %6 = vector.shape_cast %5 : vector<1x1x32xf32> to vector<1x32xf32>
    %7 = vector.broadcast %6 : vector<1x32xf32> to vector<8x32xf32>
    %8 = arith.addf %4, %7 : vector<8x32xf32>
    %cst_8 = arith.constant 5.000000e-01 : f32
    %9 = vector.broadcast %cst_8 : f32 to vector<8x32xf32>
    %10 = arith.mulf %9, %8 : vector<8x32xf32>
    %cst_9 = arith.constant 0.707106769 : f32
    %11 = vector.broadcast %cst_9 : f32 to vector<8x32xf32>
    %12 = arith.mulf %8, %11 : vector<8x32xf32>
    %13 = math.erf %12 : vector<8x32xf32>
    %cst_10 = arith.constant 1.000000e+00 : f32
    %14 = vector.broadcast %cst_10 : f32 to vector<8x32xf32>
    %15 = arith.addf %14, %13 : vector<8x32xf32>
    %16 = arith.mulf %10, %15 : vector<8x32xf32>
    %c0_11 = arith.constant 0 : index
    %c0_12 = arith.constant 0 : index
    %c0_13 = arith.constant 0 : index
    %c0_14 = arith.constant 0 : index
    %17 = vector.load %arg6[%c0_11, %c0_12, %c0_13, %c0_14] : memref<1x1x32x32xf32, #tpu.memory_space<vmem>>, vector<1x1x32x32xf32>
    %18 = vector.shape_cast %17 : vector<1x1x32x32xf32> to vector<32x32xf32>
    %cst_15 = arith.constant dense<0.000000e+00> : vector<8x32xf32>
    %19 = tpu.matmul %16, %18, %cst_15 {dimension_numbers = #tpu.dot_dimension_numbers<[1], [0], [0], [1], [0, 0, 1, 1], [], []>} : vector<8x32xf32>, vector<32x32xf32>, vector<8x32xf32> -> vector<8x32xf32>
    %c0_16 = arith.constant 0 : index
    %c0_17 = arith.constant 0 : index
    %c0_18 = arith.constant 0 : index
    %c0_19 = arith.constant 0 : index
    %20 = vector.load %arg7[%c0_16, %c0_17, %c0_18, %c0_19] : memref<1x1x1x32xf32, #tpu.memory_space<vmem>>, vector<1x1x1x32xf32>
    %21 = vector.shape_cast %20 : vector<1x1x1x32xf32> to vector<1x32xf32>
    %22 = vector.broadcast %21 : vector<1x32xf32> to vector<8x32xf32>
    %23 = arith.addf %19, %22 : vector<8x32xf32>
    %c0_20 = arith.constant 0 : index
    %c0_21 = arith.constant 0 : index
    %c0_22 = arith.constant 0 : index
    %c0_23 = arith.constant 0 : index
    %24 = vector.load %arg8[%c0_20, %c0_21, %c0_22, %c0_23] : memref<1x1x8x32xf32, #tpu.memory_space<vmem>>, vector<1x1x8x32xf32>
    %25 = vector.shape_cast %24 : vector<1x1x8x32xf32> to vector<8x32xf32>
    %26 = vector.shape_cast %23 : vector<8x32xf32> to vector<1x1x8x32xf32>
    tpu.vector_store %arg8[%c0_20, %c0_21, %c0_22, %c0_23], %26 {strides = array<i32>} : memref<1x1x8x32xf32, #tpu.memory_space<vmem>>, vector<1x1x8x32xf32>,
    return
  }
  func.func @transform_0(%arg0: i32, %arg1: i32, %arg2: i32) -> (i32, i32, i32) {
    %c0_i32 = arith.constant 0 : i32
    %c0_i32_0 = arith.constant 0 : i32
    return %arg1, %arg2, %c0_i32 : i32, i32, i32
  }
  func.func @transform_1(%arg0: i32, %arg1: i32, %arg2: i32) -> (i32, i32, i32) {
    %c0_i32 = arith.constant 0 : i32
    %c0_i32_0 = arith.constant 0 : i32
    %c0_i32_1 = arith.constant 0 : i32
    return %arg0, %c0_i32, %c0_i32_0 : i32, i32, i32
  }
  func.func @transform_2(%arg0: i32, %arg1: i32, %arg2: i32) -> (i32, i32, i32) {
    %c0_i32 = arith.constant 0 : i32
    %c0_i32_0 = arith.constant 0 : i32
    %c0_i32_1 = arith.constant 0 : i32
    return %arg0, %c0_i32, %c0_i32_0 : i32, i32, i32
  }
  func.func @transform_3(%arg0: i32, %arg1: i32, %arg2: i32) -> (i32, i32, i32, i32) {
    %c0_i32 = arith.constant 0 : i32
    %c0_i32_0 = arith.constant 0 : i32
    %c0_i32_1 = arith.constant 0 : i32
    %c0_i32_2 = arith.constant 0 : i32
    return %arg0, %c0_i32, %c0_i32_0, %c0_i32_1 : i32, i32, i32, i32
  }
  func.func @transform_4(%arg0: i32, %arg1: i32, %arg2: i32) -> (i32, i32, i32, i32) {
    %c0_i32 = arith.constant 0 : i32
    %c0_i32_0 = arith.constant 0 : i32
    %c0_i32_1 = arith.constant 0 : i32
    %c0_i32_2 = arith.constant 0 : i32
    return %arg0, %c0_i32, %c0_i32_0, %c0_i32_1 : i32, i32, i32, i32
  }
  func.func @transform_5(%arg0: i32, %arg1: i32, %arg2: i32) -> (i32, i32, i32, i32) {
    %c0_i32 = arith.constant 0 : i32
    %c0_i32_0 = arith.constant 0 : i32
    return %arg1, %arg0, %arg2, %c0_i32 : i32, i32, i32, i32
  }
}

</mosaic_0001>

<bundles_post_ra>
// kernel: tpu_custom_call.1
= control target key start
LH: loop header
LB: loop body
LE: loop exit
PB: predicated region body
PF: predicated region fallthrough
CT: control target
= control target key end

     0   :  { %s1598_s0 = inlined_call_operand.hbm [shape: f32[2,8,32], index: 0, kind: input, shape index: {}]   ;;  %s1599_s1 = inlined_call_operand.hbm [shape: f32[3,32,32], index: 1, kind: input, shape index: {}]   ;;  %s1600_s2 = inlined_call_operand.vmem [shape: f32[3,1,32], index: 2, kind: input, shape index: {}]   ;;  %s1601_s3 = inlined_call_operand.hbm [shape: f32[3,1,32,32], index: 3, kind: input, shape index: {}]   ;;  %s1602_s4 = inlined_call_operand.vmem [shape: f32[3,1,1,32], index: 4, kind: input, shape index: {}]   ;;  %s1603_s5 = inlined_call_operand.hbm [shape: f32[2,3,8,32], index: 5, kind: output, shape index: {}]  }
   0x1   :  { %1620 = sst [smem:[#allocation23_spill]] %s1599_s1 }
   0x2   :  { %1621 = sst [smem:[#allocation24_spill]] %s1600_s2 }
   0x3   :  { %1622 = sst [smem:[#allocation25_spill]] %s1602_s4 }
   0x4   :  { %1623 = sst [smem:[#allocation26_spill]] %s1603_s5 }
   0x5   :  { %10 = vsyncpa [#allocation3], 0 }
   0x6   :  { %12 = vsyncpa [#allocation3 + $0x1], 0 }
   0x7   :  { %13 = vsyncpa [#allocation6], 0 }
   0x8   :  { %15 = vsyncpa [#allocation6 + $0x1], 0 }
   0x9   :  { %16 = vsyncpa [#allocation4], 0 }
   0xa   :  { %18 = vsyncpa [#allocation4 + $0x1], 0  ;;  %s1209_s18 = smov 0   ;;  %s1211_s19 = smov 0  }
   0xb   :  { %s1213_s20 = smov 0   ;;  %s1215_s21 = smov 0  }
   0xc   :  { %s1217_s22 = smov 0   ;;  %s1219_s23 = smov 0  }
   0xd   :  { %s1221_s24 = smov 0   ;;  %s1223_s25 = smov 0  }
   0xe   :  { %s1225_s26 = smov 0   ;;  %s1227_s27 = smov 0  }
   0xf   :  { %s1229_s28 = smov 0   ;;  %s1231_s29 = smov 0  }
  0x10   :  { %s1233_s30 = smov 0   ;;  %s1235_s6 = smov 0  }
  0x11 LB: > { %1624 = sst [smem:[#allocation12_spill]] %s1136_s23  ;;  %p60_p0 = scmp.eq.s32.totalorder %s1168_s6, 0  ;;  %s1168_s6 = sphi %s1235_s6, %s24_s6   ;;  %s1164_s30 = sphi %s1233_s30, %s1670_s30   ;;  %s1160_s29 = sphi %s1231_s29, %s1669_s29   ;;  %s1156_s28 = sphi %s1229_s28, %s1668_s28   ;;  %s1152_s27 = sphi %s1227_s27, %s1667_s27   ;;  %s1148_s26 = sphi %s1225_s26, %s1666_s26   ;;  %s1144_s25 = sphi %s1223_s25, %s1678_s25   ;;  %s1140_s24 = sphi %s1221_s24, %s1677_s24   ;;  %s1136_s23 = sphi %s1219_s23, %s1664_s23   ;;  %s1132_s22 = sphi %s1217_s22, %s1676_s22   ;;  %s1128_s21 = sphi %s1215_s21, %s1675_s21   ;;  %s1124_s20 = sphi %s1213_s20, %s1674_s20   ;;  %s1120_s19 = sphi %s1211_s19, %s1673_s19   ;;  %s1116_s18 = sphi %s1209_s18, %s1672_s18  }
  0x12   : > { %1625 = sst [smem:[#allocation13_spill]] %s1148_s26  ;;  %p85_p1 = scmp.ne.s32.totalorder %s1136_s23, %s1132_s22 }
  0x13   : > { %1626 = sst [smem:[#allocation14_spill]] %s1152_s27  ;;  %p1606_p3 = scmp.lt.s32.totalorder %s1168_s6, 6 }
  0x14   : > { %1627 = sst [smem:[#allocation15_spill]] %s1156_s28  ;;  %p87_p2 = por %p85_p1, %p60_p0 }
  0x15   : > { %1628 = sst [smem:[#allocation16_spill]] %s1160_s29  ;;  %s242_s7 = sand.u32 1, %s1168_s6  }
  0x16   : > { %1629 = sst [smem:[#allocation17_spill]] %s1164_s30  ;;  %s244_s8 = sand.u32 1, %s1136_s23  }
  0x17   : > { %s1287_s9 = sshll.u32 %s244_s8, 5  ;;  %s1604_s10 = sshll.u32 %s1164_s30, 9 }
  0x18   : > { %s1630_s1 = sld [smem:[#allocation23_spill]]  ;;  %s246_s14 = scalar_lea.vmem [#allocation5], %s1287_s9 }
  0x19   : > { %s253_s15 = sshll.u32 %s246_s14, 4  ;;  %p1302_p4 = pnand %p1606_p3, %p87_p2  ;;  %s1298_s15 = int_to_ptr.vmem [resolvable:$true] %s253_s15 }
  0x1a   : > { %s1306_s17 = scalar_lea.sflag [#allocation6], %s242_s7 }
  0x1b   : > { %p1616_p6 = pneg %p1302_p4 }
  0x1e   : > { %s1295_s13 = scalar_lea.hbm %s1630_s1, %s1604_s10  ;;  %s933_s14 = scalar_lea.hbm %s1630_s1, 1536 }
  0x1f   : > { %s928_s8 = scalar_lea.hbm %s1295_s13, 512  ;;  %p934_p9 = scmp.lt.u32.totalorder %s1295_s13, %s1630_s1 }
  0x20   : > { %p929_p5 = scmp.ne.s32.totalorder %s1295_s13, %s928_s8  ;;  %p935_p10 = scmp.lt.u32.totalorder %s933_s14, %s928_s8 }
  0x21   : > { %p937_p12 = scmp.lt.u32.totalorder %s928_s8, %s1295_s13 }
  0x22   : > { %p931_p7 = pnand %p1616_p6, %p929_p5  ;;  %p936_p11 = por %p935_p10, %p934_p9 }
  0x24   : > { %p932_p8 = pneg %p931_p7  ;;  %p938_p13 = por %p937_p12, %p936_p11 }
  0x26   : > { %p939_p1 = pnand %p938_p13, %p932_p8 }
  0x28   : > { %942 = shalt.err (!%p939_p1)
}
  0x29   : > { %s943_s7 = scalar_lea.vmem %s1298_s15, 512  ;;  %s1170_s11 = smov [#allocation5]  }
  0x2a   : > { %p944_p2 = scmp.ne.s32.totalorder %s1298_s15, %s943_s7  ;;  %s948_s12 = sshll.u32 %s1170_s11, 4  ;;  %s949_s12 = int_to_ptr.vmem [resolvable:$false] %s948_s12 }
  0x2b   : > { %s950_s5 = scalar_lea.vmem %s949_s12, 1024  ;;  %p951_p3 = scmp.lt.s32.totalorder %s1298_s15, %s949_s12 }
  0x2c   : > { %p946_p5 = pnand %p944_p2, %p1616_p6  ;;  %p952_p9 = scmp.lt.s32.totalorder %s950_s5, %s943_s7 }
  0x2e   : > { %p947_p7 = pneg %p946_p5  ;;  %p953_p10 = por %p952_p9, %p951_p3 }
  0x30   : > { %p954_p11 = pnand %p953_p10, %p947_p7 }
  0x32   : > { %957 = shalt.err (!%p954_p11)
}
  0x33   : > { %s1607_s10 = smov 128   ;;  %s1608_s8 = smov 8  }
  0x34   : > { %799 = dma.hbm_to_vmem [thread:$0]  (!%p1302_p4), %s1295_s13, 512, %s1298_s15, %s1306_s17, %s1607_s10, %s1607_s10, %s1608_s8  }
  0x35   : > { %p91_p3 = scmp.ne.s32.totalorder %s1132_s22, %s1128_s21  ;;  %s1632_s14 = sshll.u32 %s1164_s30, 9 }
  0x36   : > { %s1344_s12 = scalar_lea.hbm %s1601_s3, %s1632_s14  ;;  %s273_s5 = scalar_lea.vmem [#allocation7], %s1287_s9 }
  0x37   : > { %s1347_s1 = sshll.u32 %s273_s5, 4  ;;  %p725_p8 = scmp.ge.s32.totalorder %s1168_s6, 1  ;;  %s1435_s1 = int_to_ptr.vmem [resolvable:$true] %s1347_s1 }
  0x38   : > { %p294_p12 = scmp.lt.s32.totalorder %s1168_s6, 7  ;;  %s1356_s13 = sadd.s32 4294967295, %s1168_s6  }
  0x39   : > { %s39_s7 = sadd.s32 1, %s1160_s29  ;;  %s43_s14 = sadd.s32 1, %s1164_s30 }
  0x3a   : > { %p1351_p13 = pnand %p725_p8, %p294_p12  ;;  %p41_p1 = scmp.ge.s32.totalorder %s39_s7, 2 }
  0x3b   : > { %s52_s9 = sadd.s32 1, %s1148_s26  ;;  %p59_p2 = scmp.ne.s32.totalorder %s1148_s26, %s1144_s25 }
  0x3c   : > { %s1633_s4 = scalar_select %p1351_p13, 1, 0 }
  0x3d   : > { %p65_p5 = scmp.ne.s32.totalorder %s1144_s25, %s1140_s24  ;;  %s1680_s7 = smov (%p41_p1, %s39_s7), 0 }
  0x3e   : > { %1634 = sst [smem:[#allocation18_spill]] %s1680_s7  ;;  %s1682_s14 = smov (!%p41_p1, %s43_s14), %s1164_s30 }
  0x3f   : > { %s47_s11 = ssub.s32 %s1160_s29, %s1680_s7  ;;  %p1373_p7 = por %p60_p0, %p59_p2 }
  0x40   : > { %p45_p9 = scmp.ge.s32.totalorder %s1682_s14, 3  ;;  %p50_p10 = scmp.eq.s32.totalorder %s47_s11, 0 }
  0x41   : > { %p66_p11 = scmp.eq.s32.totalorder %s1356_s13, 0  ;;  %s78_s24 = sadd.s32 1, %s1136_s23 }
  0x42   : > { %s1684_s14 = smov (%p45_p9, %s1682_s14), 0  ;;  %s186_s27 = sadd.s32 1, %s1124_s20 }
  0x43   : > { %1636 = sst [smem:[#allocation19_spill]] %s1684_s14  ;;  %p1384_p0 = por %p66_p11, %p65_p5 }
  0x44   : > { %s1382_s10 = scalar_select %p50_p10, %s1148_s26, %s52_s9  }
  0x45   : > { %s1638_s8 = scalar_select %p1384_p0, 1, 0 }
  0x46   : > { %1637 = sst [smem:[#allocation20_spill]] %s1382_s10  ;;  %s75_s15 = ssub.s32 %s1164_s30, %s1684_s14 }
  0x47   : > { %p76_p8 = scmp.eq.s32.totalorder %s75_s15, 0  ;;  %p1393_p12 = por %p91_p3, %p66_p11 }
  0x48   : > { %s181_s2 = sor.u32 %s75_s15, %s47_s11  ;;  %p196_p2 = scmp.ne.s32.totalorder %s1124_s20, %s1120_s19 }
  0x49   : > { %s1639_s7 = scalar_select %p1393_p12, 1, 0 }
  0x4a   : > { %s1399_s28 = scalar_select %p76_p8, %s1136_s23, %s78_s24  }
  0x4b   : > { %p184_p1 = scmp.eq.s32.totalorder %s181_s2, 0  ;;  %p197_p5 = scmp.eq.s32.totalorder %s1356_s13, 5 }
  0x4c   : > { %1640 = sst [smem:[#allocation21_spill]] %s1399_s28  ;;  %p202_p9 = scmp.ne.s32.totalorder %s1120_s19, %s1116_s18 }
  0x4d   : > { %s1407_s9 = scalar_select %p184_p1, %s1124_s20, %s186_s27  }
  0x4e   : > { %p1409_p10 = por %p197_p5, %p196_p2  ;;  %s1643_s21 = sadd.s32 4294967294, %s1168_s6  }
  0x4f   : > { %1641 = sst [smem:[#allocation22_spill]] %s1407_s9  ;;  %p203_p3 = scmp.eq.s32.totalorder %s1643_s21, 5 }
  0x50   : > { %s1642_s14 = scalar_select %p1409_p10, 1, 0 }
  0x51   : > { %s223_s30 = sand.u32 1, %s1148_s26   ;;  %s718_s10 = sshll.u32 %s1160_s29, 7 }
  0x52   : > { %p1417_p11 = por %p203_p3, %p202_p9  ;;  %s717_s11 = sshll.u32 %s223_s30, 3 }
  0x53   : > { %s1424_s28 = scalar_lea.hbm %s1598_s0, %s718_s10  ;;  %p1645_p8 = scmp.lt.s32.totalorder %s1168_s6, 6 }
  0x54   : > { %s1644_s15 = scalar_select %p1417_p11, 1, 0 }
  0x55   : > { %p1430_p1 = pnand %p1645_p8, %p1373_p7  ;;  %s227_s21 = scalar_lea.vmem [#allocation2], %s717_s11 }
  0x56   : > { %s235_s29 = sshll.u32 %s227_s21, 4  ;;  %s224_s10 = scalar_lea.sflag [#allocation3], %s223_s30  ;;  %s1437_s29 = int_to_ptr.vmem [resolvable:$true] %s235_s29 }
  0x57   : > { %s958_s24 = scalar_lea.hbm %s1424_s28, 128  ;;  %p960_p5 = pneg %p1430_p1 }
  0x58   : > { %p959_p2 = scmp.ne.s32.totalorder %s1424_s28, %s958_s24  ;;  %s963_s26 = scalar_lea.hbm %s1598_s0, 256 }
  0x59   : > { %p964_p3 = scmp.lt.u32.totalorder %s1424_s28, %s1598_s0  ;;  %p965_p8 = scmp.lt.u32.totalorder %s963_s26, %s958_s24 }
  0x5a   : > { %p961_p9 = pnand %p960_p5, %p959_p2  ;;  %p967_p11 = scmp.lt.u32.totalorder %s958_s24, %s1424_s28 }
  0x5b   : > { %p966_p6 = por %p965_p8, %p964_p3 }
  0x5c   : > { %p962_p7 = pneg %p961_p9 }
  0x5d   : > { %p968_p10 = por %p967_p11, %p966_p6 }
  0x5f   : > { %p969_p12 = pnand %p968_p10, %p962_p7 }
  0x61   : > { %972 = shalt.err (!%p969_p12)
}
  0x62   : > { %s973_s30 = scalar_lea.vmem %s1437_s29, 128  ;;  %s1173_s11 = smov [#allocation2]  }
  0x63   : > { %p974_p2 = scmp.ne.s32.totalorder %s1437_s29, %s973_s30  ;;  %s978_s21 = sshll.u32 %s1173_s11, 4  ;;  %s979_s21 = int_to_ptr.vmem [resolvable:$false] %s978_s21 }
  0x64   : > { %s980_s23 = scalar_lea.vmem %s979_s21, 256  ;;  %p981_p13 = scmp.lt.s32.totalorder %s1437_s29, %s979_s21 }
  0x65   : > { %p976_p9 = pnand %p974_p2, %p960_p5  ;;  %p982_p3 = scmp.lt.s32.totalorder %s980_s23, %s973_s30 }
  0x67   : > { %p977_p0 = pneg %p976_p9  ;;  %p983_p8 = por %p982_p3, %p981_p13 }
  0x69   : > { %p984_p6 = pnand %p983_p8, %p977_p0 }
  0x6b   : > { %987 = shalt.err (!%p984_p6)
}
  0x6c   : > { %796 = dma.hbm_to_vmem [thread:$0]  (!%p1430_p1), %s1424_s28, 128, %s1437_s29, %s224_s10  }
  0x6d   : > { %s988_s26 = scalar_lea.hbm %s1344_s12, 512  ;;  %p1647_p10 = pneg %p1302_p4 }
  0x6e   : > { %p989_p12 = scmp.ne.s32.totalorder %s1344_s12, %s988_s26  ;;  %s993_s5 = scalar_lea.hbm %s1601_s3, 1536 }
  0x6f   : > { %p994_p13 = scmp.lt.u32.totalorder %s1344_s12, %s1601_s3  ;;  %p995_p0 = scmp.lt.u32.totalorder %s993_s5, %s988_s26 }
  0x70   : > { %p991_p11 = pnand %p989_p12, %p1647_p10  ;;  %p997_p2 = scmp.lt.u32.totalorder %s988_s26, %s1344_s12 }
  0x71   : > { %p996_p7 = por %p995_p0, %p994_p13 }
  0x72   : > { %p992_p5 = pneg %p991_p11 }
  0x73   : > { %p998_p9 = por %p997_p2, %p996_p7 }
  0x75   : > { %p999_p3 = pnand %p998_p9, %p992_p5 }
  0x77   : > { %1002 = shalt.err (!%p999_p3)
}
  0x78   : > { %s1003_s28 = scalar_lea.vmem %s1435_s1, 512  ;;  %p1648_p8 = pmov %p1647_p10 }
  0x79   : > { %p1004_p1 = scmp.ne.s32.totalorder %s1435_s1, %s1003_s28  ;;  %s1174_s29 = smov [#allocation7]  }
  0x7a   : > { %s1008_s10 = sshll.u32 %s1174_s29, 4  ;;  %s1009_s10 = int_to_ptr.vmem [resolvable:$false] %s1008_s10 }
  0x7b   : > { %p1006_p6 = pnand %p1004_p1, %p1648_p8  ;;  %s1010_s30 = scalar_lea.vmem %s1009_s10, 1024 }
  0x7c   : > { %p1011_p10 = scmp.lt.s32.totalorder %s1435_s1, %s1009_s10  ;;  %p1012_p11 = scmp.lt.s32.totalorder %s1010_s30, %s1003_s28 }
  0x7d   : > { %p1007_p12 = pneg %p1006_p6 }
  0x7e   : > { %p1013_p13 = por %p1012_p11, %p1011_p10 }
  0x80   : > { %p1014_p0 = pnand %p1013_p13, %p1007_p12 }
  0x82   : > { %1017 = shalt.err (!%p1014_p0)
}
  0x83   : > { %s1649_s11 = smov 8   ;;  %s1650_s21 = smov 128  }
  0x84   : > { %802 = dma.hbm_to_vmem [thread:$0]  (!%p1302_p4), %s1344_s12, 512, %s1435_s1, %s1306_s17, %s1650_s21, %s1650_s21, %s1649_s11  }
  0x85   : > { %p1651_p5 = scmp.ne.s32.totalorder %s1633_s4, 0 }
  0x86   : > { %s300_s23 = sand.u32 (!%p1651_p5), 1, %s1144_s25   ;;  %p1652_p7 = scmp.ne.s32.totalorder (!%p1651_p5), %s1638_s8, 0 }
  0x87   : > { %298 = sbr.rel (%p1651_p5) target bundleno = 617 (0x269), region = 40  ;;  %s726_s26 = sshll.u32 (!%p1651_p5), %s300_s23, 3 }
  0x88   : > { %s301_s9 = scalar_lea.sflag (!%p1651_p5), [#allocation3], %s300_s23  ;;  %s304_s24 = scalar_lea.vmem (!%p1651_p5), [#allocation2], %s726_s26 }
  0x8e   : > { %1103 = dma.done.wait (%p1652_p7), %s301_s9, 128  }
  0x8f   : > { %1105 = vsyncadd (%p1652_p7), %s301_s9, 4294967168  ;;  %s309_s16 = sand.u32 1, %s1356_s13   ;;  %s311_s5 = sand.u32 1, %s1132_s22  }
  0x90   : > { %s727_s1 = sshll.u32 %s311_s5, 5  ;;  %s310_s17 = scalar_lea.sflag [#allocation6], %s309_s16 }
  0x91   : > { %s313_s4 = scalar_lea.vmem [#allocation5], %s727_s1  ;;  %p1653_p4 = scmp.ne.s32.totalorder %s1639_s7, 0 }
  0x93   : > { %1107 = dma.done.wait (%p1653_p4), %s310_s17, 1024  }
  0x94   : > { %1109 = vsyncadd (%p1653_p4), %s310_s17, 4294966272  ;;  %v1175_v0 = vmov 0.0|0.0   ;;  %vm1176_vm0 = vmmov 0   ;;  %v1177_v1 = vmov 0.0   ;;  %v372_v2 = vld [vmem:[%s313_s4] sm:$0xff]  ;;  %v373_v3 = vld [vmem:[%s313_s4 + $0x8] sm:$0xff] }
  0x95   : > { %772 = vmatprep.subr.bf16.mxu0 %v1175_v0  ;;  %758 = vmatprep.mubr.msk.f32.mxu0 %vm1176_vm0, %v1177_v1  ;;  %v374_v4 = vld [vmem:[%s313_s4 + $0x10] sm:$0xff]  ;;  %v773_v5 = vpack.c.bf16 %v373_v3, %v372_v2  ;;  %v375_v6 = vld [vmem:[%s313_s4 + $0x18] sm:$0xff]  ;;  %s1654_s8 = sld [smem:[#allocation15_spill]]  ;;  %vm383_vm1 = vcmask 261120   ;;  %s322_s12 = scalar_lea.vmem [#allocation7], %s727_s1 }
  0x96   : > { %778 = vmatprep.subr.bf16.mxu1 %v1175_v0  ;;  %769 = vmatprep.mubr.msk.f32.mxu1 %vm1176_vm0, %v1177_v1  ;;  %v776_v7 = vpack.c.bf16 %v375_v6, %v374_v4  ;;  %v371_v8 = vld [vmem:[%s304_s24] sm:$0xff]  ;;  %v462_v9 = vld [vmem:[%s322_s12] sm:$0xff]  ;;  %v463_v10 = vld [vmem:[%s322_s12 + $0x8] sm:$0xff]  ;;  %s1655_s13 = sld [smem:[#allocation14_spill]]  ;;  %s1656_s28 = sld [smem:[#allocation24_spill]] }
  0x97   : > { %774 = vmatpush3.bf16.msra.mxu0 %v773_v5  ;;  %v779_v11 = vpack.c.bf16 %v463_v10, %v462_v9  ;;  %v464_v12 = vld [vmem:[%s322_s12 + $0x10] sm:$0xff]  ;;  %v465_v13 = vld [vmem:[%s322_s12 + $0x18] sm:$0xff]  ;;  %s362_s10 = sand.u32 1, %s1120_s19   ;;  %s1657_s26 = sld [smem:[#allocation25_spill]] }
  0x98   : > { %775 = vmatprep.subr.bf16.mxu0 %v1175_v0  ;;  %v782_v14 = vpack.c.bf16 %v465_v13, %v464_v12  ;;  %s729_s11 = sshll.u32 %s362_s10, 3  ;;  %s1658_s12 = sld [smem:[#allocation26_spill]] }
  0x99   : > { %780 = vmatpush3.bf16.msra.mxu1 %v779_v11  ;;  %s364_s5 = scalar_lea.vmem [#allocation8], %s729_s11  ;;  %p1659_p3 = scmp.ne.s32.totalorder %s1642_s14, 0 }
  0x9a   : > { %781 = vmatprep.subr.bf16.mxu1 %v1175_v0  ;;  %s564_s1 = sshll.u32 %s364_s5, 4  ;;  %s1522_s1 = int_to_ptr.vmem [resolvable:$true] %s564_s1 }
  0x9b   : > { %777 = vmatpush3.bf16.msra.mxu0 %v776_v7  ;;  %p365_p2 = scmp.lt.s32.totalorder %s1654_s8, 2 }
  0x9c   : > { %s784_s30 = smul.u32 3, %s1655_s13  ;;  %s1018_s13 = scalar_lea.vmem %s1522_s1, 128 }
  0x9d   : > { %783 = vmatpush3.bf16.msra.mxu1 %v782_v14  ;;  %s366_s7 = scalar_select %p365_p2, %s1654_s8, 2 }
  0x9e   : > { %759 = vmatmul.mubr.msk.f32.vlgmr.msra.gmra.mrb[0].mxu0 %vm383_vm1, %v371_v8  ;;  %s560_s24 = sadd.s32 %s1654_s8, %s784_s30  ;;  %s548_s8 = scalar_lea.sflag [#allocation4], %s362_s10 }
  0x9f   : > { %s367_s29 = scalar_lea.vmem %s1656_s28, %s366_s7  ;;  %s370_s9 = scalar_lea.vmem %s1657_s26, %s366_s7 }
  0xa0   : > { %v730_v15 = vld [vmem:[%s367_s29] ss:$0 sm:$0xff]  ;;  %s735_s16 = sshll.u32 %s560_s24, 7  ;;  %p1019_p9 = scmp.ne.s32.totalorder %s1522_s1, %s1018_s13 }
  0xa1   : > { %v732_v24 = vld [vmem:[%s370_s9] ss:$0 sm:$0xff]  ;;  %s1520_s2 = scalar_lea.hbm %s1658_s12, %s735_s16  ;;  %s1178_s7 = smov [#allocation8]  }
  0xa2   : > { %p1020_p1 = pnand %p1019_p9, %p1659_p3  ;;  %s1022_s27 = sshll.u32 %s1178_s7, 4  ;;  %s1023_s27 = int_to_ptr.vmem [resolvable:$false] %s1022_s27 }
  0xa3   : > { %s1024_s28 = scalar_lea.vmem %s1023_s27, 256  ;;  %p1025_p6 = scmp.lt.s32.totalorder %s1522_s1, %s1023_s27 }
  0xa4   : > { %p1021_p8 = pneg %p1020_p1  ;;  %p1026_p12 = scmp.lt.s32.totalorder %s1024_s28, %s1018_s13 }
  0xa6   : > { %p1027_p10 = por %p1026_p12, %p1025_p6 }
  0xa8   : > { %p1028_p11 = pnand %p1027_p10, %p1021_p8 }
 0x171   : > { %v453_v16 = vpop.f32.mrb[0].mxu0 }
 0x172   : > { %v454_v17 = vadd.f32 %v730_v15, %v453_v16  ;;  %v760_v18 = vpop.f32.mrb[1].mxu0 }
 0x174   : > { %v458_v19 = vmul.f32 0.70710677, %v454_v17  ;;  %v457_v21 = vmul.f32 0.5, %v454_v17 }
 0x176   : > { %926 = verf.f32 %v458_v19 }
 0x180   : > { %v927_v20 = vpop.eup %926 }
 0x181   : > { %v460_v22 = vadd.f32 1.0, %v927_v20 }
 0x183   : > { %v461_v23 = vmul.f32 %v460_v22, %v457_v21 }
 0x185   : > { %770 = vmatmul.mubr.msk.f32.vlgmr.msra.gmra.mrb[0].mxu1 %vm383_vm1, %v461_v23 }
 0x258   : > { %v542_v25 = vpop.f32.mrb[0].mxu1 }
 0x259   : > { %v543_v26 = vadd.f32 %v732_v24, %v542_v25  ;;  %v771_v27 = vpop.f32.mrb[1].mxu1 }
 0x25b   : > { %546 = vst.msk [vmem:[%s364_s5] sm:$0xff] %vm383_vm1, %v543_v26 }
 0x25c   : > { %1031 = shalt.err (!%p1028_p11)
}
 0x25d   : > { %s1032_s29 = scalar_lea.hbm %s1520_s2, 128  ;;  %s1036_s11 = scalar_lea.hbm %s1658_s12, 768 }
 0x25e   : > { %p1033_p13 = scmp.ne.s32.totalorder %s1520_s2, %s1032_s29  ;;  %p1037_p7 = scmp.lt.u32.totalorder %s1520_s2, %s1658_s12 }
 0x25f   : > { %p1038_p4 = scmp.lt.u32.totalorder %s1036_s11, %s1032_s29  ;;  %p1040_p9 = scmp.lt.u32.totalorder %s1032_s29, %s1520_s2 }
 0x260   : > { %p1034_p0 = pnand %p1033_p13, %p1659_p3 }
 0x261   : > { %p1039_p2 = por %p1038_p4, %p1037_p7 }
 0x262   : > { %p1035_p5 = pneg %p1034_p0 }
 0x263   : > { %p1041_p1 = por %p1040_p9, %p1039_p2 }
 0x265   : > { %p1042_p8 = pnand %p1041_p1, %p1035_p5 }
 0x267   : > { %1045 = shalt.err (!%p1042_p8)
}
 0x268   : > { %791 = dma.vmem_to_hbm [thread:$0]  (%p1659_p3), %s1522_s1, 128, %s1520_s2, %s548_s8  }
 0x269 PF: > { %p808_p6 = scmp.ge.s32.totalorder %s1168_s6, 2  ;;  %s576_s26 = sand.u32 1, %s1116_s18  }
 0x26a   : > { %p1660_p12 = scmp.ne.s32.totalorder %s1644_s15, 0  ;;  %s577_s9 = scalar_lea.sflag [#allocation4], %s576_s26 }
 0x26c   : > { %p804_p10 = pnand %p808_p6, %p1660_p12 }
 0x26e   : > { %1111 = dma.done.wait (!%p804_p10), %s577_s9, 128  }
 0x26f   : > { %1113 = vsyncadd (!%p804_p10), %s577_s9, 4294967168  ;;  %s24_s6 = sadd.s32 1, %s1168_s6   ;;  %s1662_s14 = sld [smem:[#allocation22_spill]] }
 0x270   : > { %p1551_p11 = scmp.ge.s32.totalorder %s24_s6, 8   ;;  %s1663_s16 = sld [smem:[#allocation12_spill]] }
 0x271   : > { %s1664_s23 = sld [smem:[#allocation21_spill]]  ;;  %s1665_s5 = sld [smem:[#allocation13_spill]] }
 0x272   : > { %s1666_s26 = sld [smem:[#allocation20_spill]]  ;;  %s1667_s27 = sld [smem:[#allocation16_spill]] }
 0x273   : > { %s1668_s28 = sld [smem:[#allocation17_spill]]  ;;  %s1669_s29 = sld [smem:[#allocation18_spill]] }
 0x274   : > { %s1670_s30 = sld [smem:[#allocation19_spill]]  ;;  %s1672_s18 = smov %s1120_s19 }
 0x275   : > { %s1673_s19 = smov %s1124_s20  ;;  %s1674_s20 = smov %s1662_s14 }
 0x276   : > { %s1675_s21 = smov %s1132_s22  ;;  %s1676_s22 = smov %s1663_s16 }
 0x277   : > { %s1677_s24 = smov %s1144_s25  ;;  %s1678_s25 = smov %s1665_s5 }
 0x278   :  { %23 = sbr.rel (!%p1551_p11) target bundleno = 17 (0x11), region = 115 }
 0x27f   :  { %582 = vsyncpa [#allocation3], 1 }
 0x280   :  { %584 = vsyncpa [#allocation3 + $0x1], 1 }
 0x281   :  { %585 = vsyncpa [#allocation6], 1 }
 0x282   :  { %587 = vsyncpa [#allocation6 + $0x1], 1 }
 0x283   :  { %588 = vsyncpa [#allocation4], 1 }
 0x284   :  { %590 = vsyncpa [#allocation4 + $0x1], 1 }

</bundles_post_ra>
